<compile_context>
chip_gen: v7x
topology: tpu7x:2x2x1
jax: 0.10.0
libtpu: 0.0.40
codegen_flags: <defaults>
</compile_context>

<pallas_src>
import jax
import jax.numpy as jnp
from jax.experimental import pallas as pl
from jax.experimental.pallas import tpu as pltpu

_LANE = 128                 # lane width (last dim)
_SUBLANE = 8                # sublane width (second-to-last dim)
_SMALL_BATCH_MAX = 1024     # grid-free path when padded batch <= this
_TARGET_BATCH_BLOCK = 2048  # preferred batch tile for the grid path
_MIN_GRID_STEPS = 4         # keep >= 4 grid steps so "parallel" can use both TCs (v7x)


def _round_up(x, m):
    return (x + m - 1) // m * m


def _mlp_kernel(x_ref, w1_ref, b1_ref, w2_ref, b2_ref, o_ref):
    # First linear + ReLU (MXU matmul with f32 accumulation; bias/ReLU on the VPU).
    h = jnp.dot(x_ref[...], w1_ref[...], preferred_element_type=jnp.float32)
    h = jnp.maximum(h + b1_ref[...], 0.0)                  # (B, hid_p) + (1, hid_p)
    # Second linear; N = n_actions (unpadded) -> small masked store, but HBM-bound
    # path saves ~32x output traffic vs. a 128-lane padded store.
    y = jnp.dot(h, w2_ref[...], preferred_element_type=jnp.float32)
    o_ref[...] = (y + b2_ref[...]).astype(o_ref.dtype)


def init_params(key, obs_size, hidden_size, n_actions, dtype=jnp.float32):
    """Deterministic PyTorch-style (uniform +/- 1/sqrt(fan_in)) init.

    Weights are stored transposed vs. PyTorch (W1: (obs, hidden), W2: (hidden,
    actions)) so the kernel computes x @ W1, h @ W2 directly. Biases are (1, dim)
    rows for clean lane broadcasting.
    """
    k1, k2, k3, k4 = jax.random.split(key, 4)
    lim1 = 1.0 / jnp.sqrt(obs_size)
    lim2 = 1.0 / jnp.sqrt(hidden_size)
    w1 = jax.random.uniform(k1, (obs_size, hidden_size), dtype, -lim1, lim1)
    b1 = jax.random.uniform(k2, (1, hidden_size), dtype, -lim1, lim1)
    w2 = jax.random.uniform(k3, (hidden_size, n_actions), dtype, -lim2, lim2)
    b2 = jax.random.uniform(k4, (1, n_actions), dtype, -lim2, lim2)
    return w1, b1, w2, b2


def pad_params(w1, b1, w2, b2):
    """Zero-pad ONLY the hidden dim to 128 lanes. Call ONCE; reuse the results.

    obs (contraction dim of matmul 1) and n_actions (output dim) are left
    unpadded: padding them only inflates HBM traffic with zeros.
    """
    obs, hidden = w1.shape
    n_actions = w2.shape[1]
    hid_p = _round_up(hidden, _LANE)
    w1p = jnp.zeros((obs, hid_p), w1.dtype).at[:, :hidden].set(w1)
    b1p = jnp.zeros((1, hid_p), b1.dtype).at[:, :hidden].set(b1)
    w2p = jnp.zeros((hid_p, n_actions), w2.dtype).at[:hidden, :].set(w2)
    b2p = b2.reshape(1, n_actions)
    return w1p, b1p, w2p, b2p


@jax.jit
def net_forward(x, w1p, b1p, w2p, b2p):
    """x: (B, obs). Padded params from pad_params(). Returns (B, n_actions)."""
    B, obs = x.shape
    n_actions = w2p.shape[1]

    # Padded batch (sublane multiple). NOTE: padded batch rows come out of the
    # kernel as ReLU(b1) @ W2 + b2 (bias broadcasts onto zero rows); they are
    # sliced off below — do not reduce over the padded batch without masking.
    B8 = _round_up(max(B, _SUBLANE), _SUBLANE)

    if B8 <= _SMALL_BATCH_MAX:
        grid_path = False
        blk = B8
    else:
        grid_path = True
        blk = min(_TARGET_BATCH_BLOCK,
                  _round_up(-(-B8 // _MIN_GRID_STEPS), _SUBLANE))
        blk = max(blk, _SUBLANE)

    # Single wrapper-side pad (batch remainder only; obs is never padded).
    B_final = _round_up(B8, blk)
    if B_final != B:
        x_p = jnp.zeros((B_final, obs), x.dtype).at[:B, :].set(x)
    else:
        x_p = x

    if not grid_path:
        # Grid-free path: whole problem lives in VMEM, no pipeline scaffolding.
        out_p = pl.pallas_call(
            _mlp_kernel,
            out_shape=jax.ShapeDtypeStruct((B_final, n_actions), x.dtype),
            in_specs=[pl.BlockSpec(memory_space=pltpu.MemorySpace.VMEM)] * 5,
            out_specs=pl.BlockSpec(memory_space=pltpu.MemorySpace.VMEM),
        )(x_p, w1p, b1p, w2p, b2p)
    else:
        # Large-batch path: tile batch, keep weights VMEM-resident (constant block
        # index => fetched once), shard the batch axis across TensorCores on v7x.
        out_p = pl.pallas_call(
            _mlp_kernel,
            out_shape=jax.ShapeDtypeStruct((B_final, n_actions), x.dtype),
            grid_spec=pl.GridSpec(
                grid=(B_final // blk,),
                in_specs=[
                    pl.BlockSpec((blk, obs), lambda i: (i, 0)),
                    pl.BlockSpec(w1p.shape, lambda i: (0, 0)),
                    pl.BlockSpec(b1p.shape, lambda i: (0, 0)),
                    pl.BlockSpec(w2p.shape, lambda i: (0, 0)),
                    pl.BlockSpec(b2p.shape, lambda i: (0, 0)),
                ],
                out_specs=pl.BlockSpec((blk, n_actions), lambda i: (i, 0)),
            ),
            compiler_params=pltpu.CompilerParams(
                dimension_semantics=("parallel",)),
        )(x_p, w1p, b1p, w2p, b2p)

    return out_p[:B, :]


if __name__ == "__main__":
    obs_size, hidden_size, n_actions = 16, 32, 4

    key = jax.random.PRNGKey(0)
    kx, kp, kx2 = jax.random.split(key, 3)

    w1, b1, w2, b2 = init_params(kp, obs_size, hidden_size, n_actions)
    # Pad once; reuse padded device arrays across every forward call.
    w1p, b1p, w2p, b2p = jax.device_put(pad_params(w1, b1, w2, b2))

    def ref_fwd(xx):
        return jnp.maximum(xx @ w1 + b1, 0.0) @ w2 + b2

    # Small batch -> grid-free VMEM-resident path.
    x_small = jax.random.normal(kx, (8, obs_size), jnp.float32)
    out_small = net_forward(x_small, w1p, b1p, w2p, b2p)
    jax.block_until_ready(out_small)
    assert out_small.shape == (8, n_actions)
    assert jnp.allclose(out_small, ref_fwd(x_small), atol=1e-5, rtol=1e-5)

    # Larger ragged batch -> batch-tiled grid path (remainder padding + >=4 steps).
    x_big = jax.random.normal(kx2, (2500, obs_size), jnp.float32)
    out_big = net_forward(x_big, w1p, b1p, w2p, b2p)
    jax.block_until_ready(out_big)
    assert out_big.shape == (2500, n_actions)
    assert jnp.allclose(out_big, ref_fwd(x_big), atol=1e-4, rtol=1e-4)

    print("KERNEL_OK")
</pallas_src>

<mosaic_0001>
module attributes {stable_mosaic.version = 11 : i64} {
  func.func @_mlp_kernel(%arg0: memref<8x16xf32, #tpu.memory_space<vmem>>, %arg1: memref<16x128xf32, #tpu.memory_space<vmem>>, %arg2: memref<1x128xf32, #tpu.memory_space<vmem>>, %arg3: memref<128x4xf32, #tpu.memory_space<vmem>>, %arg4: memref<1x4xf32, #tpu.memory_space<vmem>>, %arg5: memref<8x4xf32, #tpu.memory_space<vmem>>) attributes {dimension_semantics = [], scalar_prefetch = 0 : i64, scratch_operands = 0 : i64, tpu.core_type = #tpu.core_type<tc>} {
    %c0 = arith.constant 0 : index
    %c0_0 = arith.constant 0 : index
    %0 = vector.load %arg0[%c0, %c0_0] : memref<8x16xf32, #tpu.memory_space<vmem>>, vector<8x16xf32>
    %c0_1 = arith.constant 0 : index
    %c0_2 = arith.constant 0 : index
    %1 = vector.load %arg1[%c0_1, %c0_2] : memref<16x128xf32, #tpu.memory_space<vmem>>, vector<16x128xf32>
    %cst = arith.constant dense<0.000000e+00> : vector<8x128xf32>
    %2 = tpu.matmul %0, %1, %cst {dimension_numbers = #tpu.dot_dimension_numbers<[1], [0], [0], [1], [0, 0, 1, 1], [], []>} : vector<8x16xf32>, vector<16x128xf32>, vector<8x128xf32> -> vector<8x128xf32>
    %c0_3 = arith.constant 0 : index
    %c0_4 = arith.constant 0 : index
    %3 = vector.load %arg2[%c0_3, %c0_4] : memref<1x128xf32, #tpu.memory_space<vmem>>, vector<1x128xf32>
    %4 = vector.broadcast %3 : vector<1x128xf32> to vector<8x128xf32>
    %5 = arith.addf %2, %4 : vector<8x128xf32>
    %cst_5 = arith.constant 0.000000e+00 : f32
    %6 = vector.broadcast %cst_5 : f32 to vector<8x128xf32>
    %7 = arith.maximumf %5, %6 : vector<8x128xf32>
    %c0_6 = arith.constant 0 : index
    %c0_7 = arith.constant 0 : index
    %8 = vector.load %arg3[%c0_6, %c0_7] : memref<128x4xf32, #tpu.memory_space<vmem>>, vector<128x4xf32>
    %cst_8 = arith.constant dense<0.000000e+00> : vector<8x4xf32>
    %9 = tpu.matmul %7, %8, %cst_8 {dimension_numbers = #tpu.dot_dimension_numbers<[1], [0], [0], [1], [0, 0, 1, 1], [], []>} : vector<8x128xf32>, vector<128x4xf32>, vector<8x4xf32> -> vector<8x4xf32>
    %c0_9 = arith.constant 0 : index
    %c0_10 = arith.constant 0 : index
    %10 = vector.load %arg4[%c0_9, %c0_10] : memref<1x4xf32, #tpu.memory_space<vmem>>, vector<1x4xf32>
    %11 = vector.broadcast %10 : vector<1x4xf32> to vector<8x4xf32>
    %12 = arith.addf %9, %11 : vector<8x4xf32>
    %c0_11 = arith.constant 0 : index
    %c0_12 = arith.constant 0 : index
    %13 = vector.load %arg5[%c0_11, %c0_12] : memref<8x4xf32, #tpu.memory_space<vmem>>, vector<8x4xf32>
    tpu.vector_store %arg5[%c0_11, %c0_12], %12 {strides = array<i32>} : memref<8x4xf32, #tpu.memory_space<vmem>>, vector<8x4xf32>,
    return
  }
}

</mosaic_0001>

<bundles_post_ra>
// kernel: net_forward.1
= control target key start
LH: loop header
LB: loop body
LE: loop exit
PB: predicated region body
PF: predicated region fallthrough
CT: control target
= control target key end

     0   :  { %v299_v0 = vmov 0.0|0.0   ;;  %vm300_vm0 = vmmov 0   ;;  %v301_v3 = vmov 0.0   ;;  %vm30_vm1 = vcmask 130048   ;;  %s398_s1 = inlined_call_operand.vmem [shape: f32[16,128], index: 1, kind: input, shape index: {}]   ;;  %s399_s3 = inlined_call_operand.vmem [shape: f32[128,4], index: 3, kind: input, shape index: {}]   ;;  %s400_s0 = inlined_call_operand.vmem [shape: f32[8,16], index: 0, kind: input, shape index: {}]   ;;  %s401_s2 = inlined_call_operand.vmem [shape: f32[1,128], index: 2, kind: input, shape index: {}]   ;;  %s402_s4 = inlined_call_operand.vmem [shape: f32[1,4], index: 4, kind: input, shape index: {}]   ;;  %s403_s5 = inlined_call_operand.vmem [shape: f32[8,4], index: 5, kind: output, shape index: {}]  }
   0x1   :  { %269 = vmatprep.subr.bf16.mxu0 %v299_v0  ;;  %v21_v1 = vld [vmem:[%s398_s1] sm:$0xff]  ;;  %v22_v2 = vld [vmem:[%s398_s1 + $0x8] sm:$0xff]  ;;  %231 = vmatprep.mubr.msk.f32.mxu0 %vm300_vm0, %v301_v3  ;;  %v107_v7 = vld [vmem:[%s399_s3 + $0x10] sm:$0xff]  ;;  %vm198_vm2 = vcmask 31744  }
   0x2   :  { %v270_v4 = vpack.c.bf16 %v22_v2, %v21_v1  ;;  %272 = vmatprep.subr.bf16.mxu1 %v299_v0  ;;  %v105_v5 = vld [vmem:[%s399_s3] sm:$0xff]  ;;  %v106_v6 = vld [vmem:[%s399_s3 + $0x8] sm:$0xff]  ;;  %266 = vmatprep.mubr.msk.f32.mxu1 %vm300_vm0, %v301_v3  ;;  %v108_v9 = vld [vmem:[%s399_s3 + $0x18] sm:$0xff] }
   0x3   :  { %v273_v8 = vpack.c.bf16 %v106_v6, %v105_v5  ;;  %v20_v10 = vld [vmem:[%s400_s0] sm:$0xff]  ;;  %v276_v11 = vpack.c.bf16 %v108_v9, %v107_v7  ;;  %v110_v13 = vld [vmem:[%s399_s3 + $0x28] sm:$0xff]  ;;  %v111_v15 = vld [vmem:[%s399_s3 + $0x30] sm:$0xff] }
   0x4   :  { %271 = vmatpush3.bf16.msra.mxu0 %v270_v4  ;;  %v109_v12 = vld [vmem:[%s399_s3 + $0x20] sm:$0xff]  ;;  %v112_v16 = vld [vmem:[%s399_s3 + $0x38] sm:$0xff]  ;;  %v114_v19 = vld [vmem:[%s399_s3 + $0x48] sm:$0xff] }
   0x5   :  { %274 = vmatpush3.bf16.msra.mxu1 %v273_v8  ;;  %v279_v14 = vpack.c.bf16 %v110_v13, %v109_v12  ;;  %v282_v17 = vpack.c.bf16 %v112_v16, %v111_v15  ;;  %v113_v18 = vld [vmem:[%s399_s3 + $0x40] sm:$0xff]  ;;  %v115_v21 = vld [vmem:[%s399_s3 + $0x50] sm:$0xff]  ;;  %v116_v22 = vld [vmem:[%s399_s3 + $0x58] sm:$0xff] }
   0x6   :  { %275 = vmatprep.subr.bf16.mxu1 %v299_v0  ;;  %v285_v20 = vpack.c.bf16 %v114_v19, %v113_v18  ;;  %v288_v23 = vpack.c.bf16 %v116_v22, %v115_v21  ;;  %v117_v24 = vld [vmem:[%s399_s3 + $0x60] sm:$0xff]  ;;  %v118_v25 = vld [vmem:[%s399_s3 + $0x68] sm:$0xff]  ;;  %v119_v27 = vld [vmem:[%s399_s3 + $0x70] sm:$0xff] }
   0x7   :  { %232 = vmatmul.mubr.msk.f32.vlgmr.msra.gmra.mrb[0].mxu0 %vm30_vm1, %v20_v10  ;;  %v291_v26 = vpack.c.bf16 %v118_v25, %v117_v24  ;;  %v120_v28 = vld [vmem:[%s399_s3 + $0x78] sm:$0xff]  ;;  %v204_v30 = vld [vmem:[%s401_s2] ss:$0 sm:$0xff] }
   0x8   :  { %v294_v29 = vpack.c.bf16 %v120_v28, %v119_v27  ;;  %v206_v35 = vld [vmem:[%s402_s4] ss:$0 sm:$0xff] }
   0x9   :  { %277 = vmatpush3.bf16.msra.mxu1 %v276_v11 }
   0xa   :  { %278 = vmatprep.subr.bf16.mxu1 %v299_v0 }
   0xd   :  { %280 = vmatpush3.bf16.msra.mxu1 %v279_v14 }
   0xe   :  { %281 = vmatprep.subr.bf16.mxu1 %v299_v0 }
  0x11   :  { %283 = vmatpush3.bf16.msra.mxu1 %v282_v17 }
  0x12   :  { %284 = vmatprep.subr.bf16.mxu1 %v299_v0 }
  0x15   :  { %286 = vmatpush3.bf16.msra.mxu1 %v285_v20 }
  0x16   :  { %287 = vmatprep.subr.bf16.mxu1 %v299_v0 }
  0x19   :  { %289 = vmatpush3.bf16.msra.mxu1 %v288_v23 }
  0x1a   :  { %290 = vmatprep.subr.bf16.mxu1 %v299_v0 }
  0x1d   :  { %292 = vmatpush3.bf16.msra.mxu1 %v291_v26 }
  0x1e   :  { %293 = vmatprep.subr.bf16.mxu1 %v299_v0 }
  0x21   :  { %295 = vmatpush3.bf16.msra.mxu1 %v294_v29 }
  0xda   :  { %v100_v31 = vpop.f32.mrb[0].mxu0 }
  0xdb   :  { %v101_v32 = vadd.f32 %v204_v30, %v100_v31  ;;  %v233_v33 = vpop.f32.mrb[1].mxu0 }
  0xdd   :  { %v104_v34 = vmax.f32 %v101_v32, 0.0 }
  0xdf   :  { %267 = vmatmul.mubr.f32.vlgmr.msra.gmra.mrb[0].mxu1 %v104_v34 }
 0x1b2   :  { %v194_v36 = vpop.f32.mrb[0].mxu1 }
 0x1b3   :  { %v195_v37 = vadd.f32 %v206_v35, %v194_v36  ;;  %v268_v38 = vpop.f32.mrb[1].mxu1 }
 0x1b5   :  { %199 = vst.msk [vmem:[%s403_s5] sm:$0xff] %vm198_vm2, %v195_v37 }

</bundles_post_ra>
